<compile_context>
chip_gen: v7x
topology: tpu7x:2x2x1
jax: 0.10.0
libtpu: 0.0.40
codegen_flags: <defaults>
</compile_context>

<pallas_src>
import math
import functools

import jax
import jax.numpy as jnp
from jax.experimental import pallas as pl
from jax.experimental.pallas import tpu as pltpu


_INV_SQRT2 = 1.0 / math.sqrt(2.0)
_SQRT_2_OVER_PI = math.sqrt(2.0 / math.pi)


def _erf_poly(z):
    """erf via Abramowitz & Stegun 7.1.26 (|abs error| <= 1.5e-7).

    Uses only Mosaic-native ops: exp + approximate reciprocal on the EUP slot,
    mul/add/abs/select on the VALU. Numerically indistinguishable from exact
    erf at bf16 matmul precision."""
    a1, a2, a3, a4, a5 = (0.254829592, -0.284496736, 1.421413741,
                          -1.453152027, 1.061405429)
    p = 0.3275911
    az = jnp.abs(z)
    t = pl.reciprocal(1.0 + p * az, approx=True)
    poly = ((((a5 * t + a4) * t + a3) * t + a2) * t + a1) * t
    e = 1.0 - poly * jnp.exp(-(az * az))
    return jnp.where(z >= 0.0, e, -e)


def _ffn_kernel(x_ref, w1_ref, b1_ref, w2_ref, b2_ref, g_ref, beta_ref, o_ref,
                xn_ref, acc_ref, *, gelu_tanh):
    j = pl.program_id(1)
    nj = pl.num_programs(1)

    # ---- once per row tile: LayerNorm (f32 stats) -> bf16 scratch; zero acc --
    @pl.when(j == 0)
    def _():
        x = x_ref[...].astype(jnp.float32)
        mean = jnp.mean(x, axis=-1, keepdims=True)
        centered = x - mean
        var = jnp.mean(centered * centered, axis=-1, keepdims=True)
        xn = centered * jax.lax.rsqrt(var + 1e-5)
        xn = xn * g_ref[...] + beta_ref[...]
        xn_ref[...] = xn.astype(jnp.bfloat16)
        acc_ref[...] = jnp.zeros_like(acc_ref)

    # ---- Linear1 chunk: (tm, d_model) @ (d_model, tn_ff), f32 accumulate ----
    h = jnp.dot(xn_ref[...], w1_ref[...], preferred_element_type=jnp.float32)

    if gelu_tanh:
        # tanh-approximate GELU in bf16: EUP tanh + packed bf16 VALU (v6e/v7x).
        hb = (h + b1_ref[...]).astype(jnp.bfloat16)
        inner = _SQRT_2_OVER_PI * (hb + 0.044715 * (hb * hb * hb))
        act = (0.5 * hb) * (1.0 + jnp.tanh(inner))
        act_bf = act.astype(jnp.bfloat16)
    else:
        # Exact (erf) GELU, matching nn.GELU() default.
        hf = h + b1_ref[...]
        act = 0.5 * hf * (1.0 + _erf_poly(hf * _INV_SQRT2))
        act_bf = act.astype(jnp.bfloat16)

    # TODO(synk): dropout is identity in eval mode; training dropout would need pltpu.prng_* masking.

    # ---- Linear2 chunk accumulated into f32 scratch ----
    acc_ref[...] += jnp.dot(act_bf, w2_ref[...],
                            preferred_element_type=jnp.float32)

    # ---- finalize: bias + residual (re-read x_ref -> short f32 live range) ----
    @pl.when(j == nj - 1)
    def _():
        y = acc_ref[...] + b2_ref[...]
        o_ref[...] = (x_ref[...].astype(jnp.float32) + y).astype(o_ref.dtype)


def _round_up(v, m):
    return ((v + m - 1) // m) * m


def _pick_ff_block(d_ff, target):
    """Return (ff_block, padded_d_ff). ff_block is either the full d_ff or a
    multiple of 128 that divides padded_d_ff."""
    if d_ff <= target:
        return d_ff, d_ff
    t = max(128, (target // 128) * 128)
    for cand in range(t, 127, -128):
        if d_ff % cand == 0:
            return cand, d_ff
    # No clean divisor: zero-pad d_ff (zero W1 cols / W2 rows contribute 0).
    return t, _round_up(d_ff, t)


def _vmem_need_bytes(tm, tn, d_model, xbytes):
    return (
        2 * tm * d_model * xbytes      # input row tiles (double-buffered)
        + 2 * tm * d_model * xbytes    # output row tiles (double-buffered)
        + 2 * 2 * 2 * d_model * tn     # bf16 W1 + W2 chunks, double-buffered
        + 2 * 4 * (tn + 3 * d_model)   # b1 chunk, b2, gamma, beta (f32)
        + 4 * tm * tn                  # f32 Linear1 / GELU intermediate
        + 2 * tm * tn                  # bf16 GELU output fed to the MXU
        + 2 * tm * d_model             # xn scratch (bf16)
        + 4 * tm * d_model             # f32 accumulator scratch
        + 2 * 4 * tm * d_model         # f32 x working copies (LN / finalize)
    )


@functools.partial(jax.jit, static_argnames=("tm", "ff_block", "gelu_tanh"))
def feed_forward(x, w1, b1, w2, b2, gamma, beta, *,
                 tm=512, ff_block=2048, gelu_tanh=False):
    """x: (batch, seq, d_model). w1: (d_model, d_ff) (transposed vs torch's
    Linear.weight), w2: (d_ff, d_model); biases / gamma / beta are 1D."""
    batch, seq, d_model = x.shape
    d_ff = w1.shape[1]
    n = batch * seq
    xb = x.dtype.itemsize

    # ---- generation-aware VMEM budget ----
    try:
        vmem_cap = int(pltpu.get_tpu_info().vmem_capacity_bytes)
    except Exception:
        vmem_cap = 64 * 1024 * 1024  # safe fallback (valid on every chip)

    # ---- row tile (multiple of 8, adapts to small n and to VMEM budget) ----
    tm_eff = min(tm, _round_up(n, 8))
    tm_eff = max(8, (tm_eff // 8) * 8)

    # ---- d_ff chunking ----
    tn_ff, d_ff_pad = _pick_ff_block(d_ff, ff_block)
    grid_ff = d_ff_pad // tn_ff

    while (_vmem_need_bytes(tm_eff, tn_ff, d_model, xb) > int(0.7 * vmem_cap)
           and tm_eff > 64):
        tm_eff = max(64, _round_up(tm_eff // 2, 8))
    # TODO(synk): for pathological d_model, also shrink tn_ff here.

    grid_rows = pl.cdiv(n, tm_eff)

    x2 = x.reshape(n, d_model)  # no padding: Pallas masks the partial last block

    # Weights streamed as bf16 (halves HBM + VMEM bytes; f32 MXU accumulation).
    w1b = w1.astype(jnp.bfloat16)
    w2b = w2.astype(jnp.bfloat16)
    b1_2 = b1.reshape(1, d_ff).astype(jnp.float32)
    if d_ff_pad != d_ff:
        w1b = jnp.pad(w1b, ((0, 0), (0, d_ff_pad - d_ff)))
        w2b = jnp.pad(w2b, ((0, d_ff_pad - d_ff), (0, 0)))
        b1_2 = jnp.pad(b1_2, ((0, 0), (0, d_ff_pad - d_ff)))
    b2_2 = b2.reshape(1, d_model).astype(jnp.float32)
    g_2 = gamma.reshape(1, d_model).astype(jnp.float32)
    be_2 = beta.reshape(1, d_model).astype(jnp.float32)

    need = _vmem_need_bytes(tm_eff, tn_ff, d_model, xb)
    vmem_limit = int(min(0.85 * vmem_cap, max(1.5 * need, 32 * 1024 * 1024)))
    vmem_limit = max(vmem_limit, 16 * 1024 * 1024)

    kernel = functools.partial(_ffn_kernel, gelu_tanh=gelu_tanh)

    out = pl.pallas_call(
        kernel,
        out_shape=jax.ShapeDtypeStruct((n, d_model), x.dtype),
        grid_spec=pltpu.PrefetchScalarGridSpec(
            num_scalar_prefetch=0,
            grid=(grid_rows, grid_ff),
            in_specs=[
                pl.BlockSpec((tm_eff, d_model), lambda i, j: (i, 0)),   # x row tile
                pl.BlockSpec((d_model, tn_ff), lambda i, j: (0, j)),    # W1 column chunk
                pl.BlockSpec((1, tn_ff), lambda i, j: (0, j)),          # b1 chunk
                pl.BlockSpec((tn_ff, d_model), lambda i, j: (j, 0)),    # W2 row chunk
                pl.BlockSpec((1, d_model), lambda i, j: (0, 0)),        # b2
                pl.BlockSpec((1, d_model), lambda i, j: (0, 0)),        # gamma
                pl.BlockSpec((1, d_model), lambda i, j: (0, 0)),        # beta
            ],
            out_specs=pl.BlockSpec((tm_eff, d_model), lambda i, j: (i, 0)),
            scratch_shapes=[
                pltpu.VMEM((tm_eff, d_model), jnp.bfloat16),   # LN output (reused per chunk)
                pltpu.VMEM((tm_eff, d_model), jnp.float32),    # Linear2 accumulator
            ],
        ),
        compiler_params=pltpu.CompilerParams(
            dimension_semantics=("parallel", "arbitrary"),
            vmem_limit_bytes=vmem_limit,
        ),
    )(x2, w1b, b1_2, w2b, b2_2, g_2, be_2)

    return out.reshape(batch, seq, d_model)


def _reference(x, w1, b1, w2, b2, gamma, beta):
    mean = jnp.mean(x, axis=-1, keepdims=True)
    var = jnp.mean((x - mean) ** 2, axis=-1, keepdims=True)
    xn = (x - mean) / jnp.sqrt(var + 1e-5) * gamma + beta
    h = xn @ w1 + b1
    h = 0.5 * h * (1.0 + jax.scipy.special.erf(h / jnp.sqrt(2.0)))
    y = h @ w2 + b2
    return x + y


def _make_params(key, d_model, d_ff):
    k1, k2, k3, k4, k5, k6 = jax.random.split(key, 6)
    # The module zero-inits the linears; small random values are used so the
    # kernel path is actually exercised. LN affine is non-trivial too.
    w1 = jax.random.normal(k1, (d_model, d_ff), dtype=jnp.float32) * 0.02
    b1 = jax.random.normal(k2, (d_ff,), dtype=jnp.float32) * 0.01
    w2 = jax.random.normal(k3, (d_ff, d_model), dtype=jnp.float32) * 0.02
    b2 = jax.random.normal(k4, (d_model,), dtype=jnp.float32) * 0.01
    gamma = 1.0 + 0.1 * jax.random.normal(k5, (d_model,), dtype=jnp.float32)
    beta = 0.05 * jax.random.normal(k6, (d_model,), dtype=jnp.float32)
    return w1, b1, w2, b2, gamma, beta


def _check(name, x, params, **kw):
    out = jax.block_until_ready(feed_forward(x, *params, **kw))
    ref = _reference(x, *params)
    assert out.shape == x.shape, f"{name}: shape mismatch"
    assert jnp.allclose(out, ref, atol=1e-2, rtol=1e-2), f"{name}: mismatch vs reference"


if __name__ == "__main__":
    key = jax.random.PRNGKey(0)
    kp1, kp2, kp3, kx1, kx2, kx3, kx4 = jax.random.split(key, 7)

    # Case 1: d_model=32, d_ff=128, batch=2, seq=8 (single row tile, single ff chunk).
    p32 = _make_params(kp1, 32, 128)
    x1 = jax.random.normal(kx1, (2, 8, 32), dtype=jnp.float32)
    _check("case1", x1, p32)

    # Case 2: batch=2, seq=5 -> partial last row block (no wrapper pad/slice).
    x2 = jax.random.normal(kx2, (2, 5, 32), dtype=jnp.float32)
    _check("case2", x2, p32)

    # Case 3: d_model=64, d_ff=256 with ff_block=128 -> two streamed d_ff chunks.
    p64 = _make_params(kp2, 64, 256)
    x3 = jax.random.normal(kx3, (2, 8, 64), dtype=jnp.float32)
    _check("case3", x3, p64, ff_block=128)

    # Case 4: d_ff=192 with ff_block=128 -> d_ff zero-padding path (192 -> 256).
    p192 = _make_params(kp3, 32, 192)
    x4 = jax.random.normal(kx4, (2, 8, 32), dtype=jnp.float32)
    _check("case4", x4, p192, ff_block=128)

    print("KERNEL_OK")
</pallas_src>

<mosaic_0001>
module attributes {stable_mosaic.version = 11 : i64} {
  func.func @_ffn_kernel(%arg0: i32, %arg1: i32, %arg2: memref<16x32xf32, #tpu.memory_space<vmem>>, %arg3: memref<32x128xbf16, #tpu.memory_space<vmem>>, %arg4: memref<1x128xf32, #tpu.memory_space<vmem>>, %arg5: memref<128x32xbf16, #tpu.memory_space<vmem>>, %arg6: memref<1x32xf32, #tpu.memory_space<vmem>>, %arg7: memref<1x32xf32, #tpu.memory_space<vmem>>, %arg8: memref<1x32xf32, #tpu.memory_space<vmem>>, %arg9: memref<16x32xf32, #tpu.memory_space<vmem>>, %arg10: memref<16x32xbf16, #tpu.memory_space<vmem>>, %arg11: memref<16x32xf32, #tpu.memory_space<vmem>>) attributes {dimension_semantics = [#tpu.dimension_semantics<parallel>, #tpu.dimension_semantics<arbitrary>], iteration_bounds = array<i64: 1, 1>, scalar_prefetch = 0 : i64, scratch_operands = 2 : i64, tpu.core_type = #tpu.core_type<tc>, window_params = [{transform_indices = @transform_0, window_bounds = array<i64: 16, 32>}, {transform_indices = @transform_1, window_bounds = array<i64: 32, 128>}, {transform_indices = @transform_2, window_bounds = array<i64: 1, 128>}, {transform_indices = @transform_3, window_bounds = array<i64: 128, 32>}, {pipeline_mode = #tpu.pipeline_mode<synchronous>, transform_indices = @transform_4, window_bounds = array<i64: 1, 32>}, {pipeline_mode = #tpu.pipeline_mode<synchronous>, transform_indices = @transform_5, window_bounds = array<i64: 1, 32>}, {pipeline_mode = #tpu.pipeline_mode<synchronous>, transform_indices = @transform_6, window_bounds = array<i64: 1, 32>}, {transform_indices = @transform_7, window_bounds = array<i64: 16, 32>}]} {
    %c0_i32 = arith.constant 0 : i32
    %0 = arith.cmpi eq, %arg1, %c0_i32 : i32
    %1 = arith.extui %0 : i1 to i32
    %c0_i32_0 = arith.constant 0 : i32
    %2 = arith.cmpi ne, %1, %c0_i32_0 : i32
    scf.if %2 {
      %c0_29 = arith.constant 0 : index
      %c0_30 = arith.constant 0 : index
      %57 = vector.load %arg2[%c0_29, %c0_30] : memref<16x32xf32, #tpu.memory_space<vmem>>, vector<16x32xf32>
      %cst_31 = arith.constant dense<0.000000e+00> : vector<16xf32>
      %58 = vector.multi_reduction <add>, %57, %cst_31 [1] : vector<16x32xf32> to vector<16xf32>
      %59 = vector.shape_cast %58 : vector<16xf32> to vector<16x1xf32>
      %cst_32 = arith.constant 3.200000e+01 : f32
      %60 = vector.broadcast %cst_32 : f32 to vector<16x1xf32>
      %61 = arith.divf %59, %60 : vector<16x1xf32>
      %62 = vector.broadcast %61 : vector<16x1xf32> to vector<16x32xf32>
      %63 = arith.subf %57, %62 : vector<16x32xf32>
      %64 = arith.mulf %63, %63 : vector<16x32xf32>
      %cst_33 = arith.constant dense<0.000000e+00> : vector<16xf32>
      %65 = vector.multi_reduction <add>, %64, %cst_33 [1] : vector<16x32xf32> to vector<16xf32>
      %66 = vector.shape_cast %65 : vector<16xf32> to vector<16x1xf32>
      %cst_34 = arith.constant 3.200000e+01 : f32
      %67 = vector.broadcast %cst_34 : f32 to vector<16x1xf32>
      %68 = arith.divf %66, %67 : vector<16x1xf32>
      %cst_35 = arith.constant 9.99999974E-6 : f32
      %69 = vector.broadcast %cst_35 : f32 to vector<16x1xf32>
      %70 = arith.addf %68, %69 : vector<16x1xf32>
      %71 = math.rsqrt %70 : vector<16x1xf32>
      %72 = vector.broadcast %71 : vector<16x1xf32> to vector<16x32xf32>
      %73 = arith.mulf %63, %72 : vector<16x32xf32>
      %c0_36 = arith.constant 0 : index
      %c0_37 = arith.constant 0 : index
      %74 = vector.load %arg7[%c0_36, %c0_37] : memref<1x32xf32, #tpu.memory_space<vmem>>, vector<1x32xf32>
      %75 = vector.broadcast %74 : vector<1x32xf32> to vector<16x32xf32>
      %76 = arith.mulf %73, %75 : vector<16x32xf32>
      %c0_38 = arith.constant 0 : index
      %c0_39 = arith.constant 0 : index
      %77 = vector.load %arg8[%c0_38, %c0_39] : memref<1x32xf32, #tpu.memory_space<vmem>>, vector<1x32xf32>
      %78 = vector.broadcast %77 : vector<1x32xf32> to vector<16x32xf32>
      %79 = arith.addf %76, %78 : vector<16x32xf32>
      %80 = arith.truncf %79 : vector<16x32xf32> to vector<16x32xbf16>
      %c0_40 = arith.constant 0 : index
      %c0_41 = arith.constant 0 : index
      %81 = vector.load %arg10[%c0_40, %c0_41] : memref<16x32xbf16, #tpu.memory_space<vmem>>, vector<16x32xbf16>
      tpu.vector_store %arg10[%c0_40, %c0_41], %80 {strides = array<i32>} : memref<16x32xbf16, #tpu.memory_space<vmem>>, vector<16x32xbf16>,
      %cst_42 = arith.constant 0.000000e+00 : f32
      %82 = vector.broadcast %cst_42 : f32 to vector<16x32xf32>
      %c0_43 = arith.constant 0 : index
      %c0_44 = arith.constant 0 : index
      %83 = vector.load %arg11[%c0_43, %c0_44] : memref<16x32xf32, #tpu.memory_space<vmem>>, vector<16x32xf32>
      tpu.vector_store %arg11[%c0_43, %c0_44], %82 {strides = array<i32>} : memref<16x32xf32, #tpu.memory_space<vmem>>, vector<16x32xf32>,
    } else {
    }
    %c0 = arith.constant 0 : index
    %c0_1 = arith.constant 0 : index
    %3 = vector.load %arg10[%c0, %c0_1] : memref<16x32xbf16, #tpu.memory_space<vmem>>, vector<16x32xbf16>
    %c0_2 = arith.constant 0 : index
    %c0_3 = arith.constant 0 : index
    %4 = vector.load %arg3[%c0_2, %c0_3] : memref<32x128xbf16, #tpu.memory_space<vmem>>, vector<32x128xbf16>
    %cst = arith.constant dense<0.000000e+00> : vector<16x128xf32>
    %5 = tpu.matmul %3, %4, %cst {dimension_numbers = #tpu.dot_dimension_numbers<[1], [0], [0], [1], [0, 0, 1, 1], [], []>} : vector<16x32xbf16>, vector<32x128xbf16>, vector<16x128xf32> -> vector<16x128xf32>
    %c0_4 = arith.constant 0 : index
    %c0_5 = arith.constant 0 : index
    %6 = vector.load %arg4[%c0_4, %c0_5] : memref<1x128xf32, #tpu.memory_space<vmem>>, vector<1x128xf32>
    %7 = vector.broadcast %6 : vector<1x128xf32> to vector<16x128xf32>
    %8 = arith.addf %5, %7 : vector<16x128xf32>
    %cst_6 = arith.constant 5.000000e-01 : f32
    %9 = vector.broadcast %cst_6 : f32 to vector<16x128xf32>
    %10 = arith.mulf %9, %8 : vector<16x128xf32>
    %cst_7 = arith.constant 0.707106769 : f32
    %11 = vector.broadcast %cst_7 : f32 to vector<16x128xf32>
    %12 = arith.mulf %8, %11 : vector<16x128xf32>
    %13 = math.absf %12 : vector<16x128xf32>
    %cst_8 = arith.constant 0.327591091 : f32
    %14 = vector.broadcast %cst_8 : f32 to vector<16x128xf32>
    %15 = arith.mulf %14, %13 : vector<16x128xf32>
    %cst_9 = arith.constant 1.000000e+00 : f32
    %16 = vector.broadcast %cst_9 : f32 to vector<16x128xf32>
    %17 = arith.addf %16, %15 : vector<16x128xf32>
    %18 = tpu.reciprocal %17 {approx = true} : vector<16x128xf32> -> vector<16x128xf32>
    %cst_10 = arith.constant 1.06140542 : f32
    %19 = vector.broadcast %cst_10 : f32 to vector<16x128xf32>
    %20 = arith.mulf %19, %18 : vector<16x128xf32>
    %cst_11 = arith.constant -1.45315206 : f32
    %21 = vector.broadcast %cst_11 : f32 to vector<16x128xf32>
    %22 = arith.addf %20, %21 : vector<16x128xf32>
    %23 = arith.mulf %22, %18 : vector<16x128xf32>
    %cst_12 = arith.constant 1.42141378 : f32
    %24 = vector.broadcast %cst_12 : f32 to vector<16x128xf32>
    %25 = arith.addf %23, %24 : vector<16x128xf32>
    %26 = arith.mulf %25, %18 : vector<16x128xf32>
    %cst_13 = arith.constant -0.284496725 : f32
    %27 = vector.broadcast %cst_13 : f32 to vector<16x128xf32>
    %28 = arith.addf %26, %27 : vector<16x128xf32>
    %29 = arith.mulf %28, %18 : vector<16x128xf32>
    %cst_14 = arith.constant 0.254829586 : f32
    %30 = vector.broadcast %cst_14 : f32 to vector<16x128xf32>
    %31 = arith.addf %29, %30 : vector<16x128xf32>
    %32 = arith.mulf %31, %18 : vector<16x128xf32>
    %33 = arith.mulf %13, %13 : vector<16x128xf32>
    %cst_15 = arith.constant 0.000000e+00 : f32
    %34 = vector.broadcast %cst_15 : f32 to vector<16x128xf32>
    %35 = arith.subf %34, %33 : vector<16x128xf32>
    %36 = math.exp %35 : vector<16x128xf32>
    %37 = arith.mulf %32, %36 : vector<16x128xf32>
    %cst_16 = arith.constant 1.000000e+00 : f32
    %38 = vector.broadcast %cst_16 : f32 to vector<16x128xf32>
    %39 = arith.subf %38, %37 : vector<16x128xf32>
    %cst_17 = arith.constant 0.000000e+00 : f32
    %40 = vector.broadcast %cst_17 : f32 to vector<16x128xf32>
    %41 = arith.cmpf oge, %12, %40 : vector<16x128xf32>
    %cst_18 = arith.constant 0.000000e+00 : f32
    %42 = vector.broadcast %cst_18 : f32 to vector<16x128xf32>
    %43 = arith.subf %42, %39 : vector<16x128xf32>
    %44 = arith.select %41, %39, %43 : vector<16x128xi1>, vector<16x128xf32>
    %cst_19 = arith.constant 1.000000e+00 : f32
    %45 = vector.broadcast %cst_19 : f32 to vector<16x128xf32>
    %46 = arith.addf %45, %44 : vector<16x128xf32>
    %47 = arith.mulf %10, %46 : vector<16x128xf32>
    %48 = arith.truncf %47 : vector<16x128xf32> to vector<16x128xbf16>
    %c0_20 = arith.constant 0 : index
    %c0_21 = arith.constant 0 : index
    %49 = vector.load %arg11[%c0_20, %c0_21] : memref<16x32xf32, #tpu.memory_space<vmem>>, vector<16x32xf32>
    %c0_22 = arith.constant 0 : index
    %c0_23 = arith.constant 0 : index
    %50 = vector.load %arg5[%c0_22, %c0_23] : memref<128x32xbf16, #tpu.memory_space<vmem>>, vector<128x32xbf16>
    %cst_24 = arith.constant dense<0.000000e+00> : vector<16x32xf32>
    %51 = tpu.matmul %48, %50, %cst_24 {dimension_numbers = #tpu.dot_dimension_numbers<[1], [0], [0], [1], [0, 0, 1, 1], [], []>} : vector<16x128xbf16>, vector<128x32xbf16>, vector<16x32xf32> -> vector<16x32xf32>
    %52 = arith.addf %49, %51 : vector<16x32xf32>
    %c0_25 = arith.constant 0 : index
    %c0_26 = arith.constant 0 : index
    %53 = vector.load %arg11[%c0_25, %c0_26] : memref<16x32xf32, #tpu.memory_space<vmem>>, vector<16x32xf32>
    tpu.vector_store %arg11[%c0_25, %c0_26], %52 {strides = array<i32>} : memref<16x32xf32, #tpu.memory_space<vmem>>, vector<16x32xf32>,
    %c0_i32_27 = arith.constant 0 : i32
    %54 = arith.cmpi eq, %arg1, %c0_i32_27 : i32
    %55 = arith.extui %54 : i1 to i32
    %c0_i32_28 = arith.constant 0 : i32
    %56 = arith.cmpi ne, %55, %c0_i32_28 : i32
    scf.if %56 {
      %c0_29 = arith.constant 0 : index
      %c0_30 = arith.constant 0 : index
      %57 = vector.load %arg11[%c0_29, %c0_30] : memref<16x32xf32, #tpu.memory_space<vmem>>, vector<16x32xf32>
      %c0_31 = arith.constant 0 : index
      %c0_32 = arith.constant 0 : index
      %58 = vector.load %arg6[%c0_31, %c0_32] : memref<1x32xf32, #tpu.memory_space<vmem>>, vector<1x32xf32>
      %59 = vector.broadcast %58 : vector<1x32xf32> to vector<16x32xf32>
      %60 = arith.addf %57, %59 : vector<16x32xf32>
      %c0_33 = arith.constant 0 : index
      %c0_34 = arith.constant 0 : index
      %61 = vector.load %arg2[%c0_33, %c0_34] : memref<16x32xf32, #tpu.memory_space<vmem>>, vector<16x32xf32>
      %62 = arith.addf %61, %60 : vector<16x32xf32>
      %c0_35 = arith.constant 0 : index
      %c0_36 = arith.constant 0 : index
      %63 = vector.load %arg9[%c0_35, %c0_36] : memref<16x32xf32, #tpu.memory_space<vmem>>, vector<16x32xf32>
      tpu.vector_store %arg9[%c0_35, %c0_36], %62 {strides = array<i32>} : memref<16x32xf32, #tpu.memory_space<vmem>>, vector<16x32xf32>,
    } else {
    }
    return
  }
  func.func @transform_0(%arg0: i32, %arg1: i32) -> (i32, i32) {
    %c0_i32 = arith.constant 0 : i32
    %c0_i32_0 = arith.constant 0 : i32
    return %arg0, %c0_i32 : i32, i32
  }
  func.func @transform_1(%arg0: i32, %arg1: i32) -> (i32, i32) {
    %c0_i32 = arith.constant 0 : i32
    %c0_i32_0 = arith.constant 0 : i32
    return %c0_i32, %arg1 : i32, i32
  }
  func.func @transform_2(%arg0: i32, %arg1: i32) -> (i32, i32) {
    %c0_i32 = arith.constant 0 : i32
    %c0_i32_0 = arith.constant 0 : i32
    return %c0_i32, %arg1 : i32, i32
  }
  func.func @transform_3(%arg0: i32, %arg1: i32) -> (i32, i32) {
    %c0_i32 = arith.constant 0 : i32
    %c0_i32_0 = arith.constant 0 : i32
    return %arg1, %c0_i32 : i32, i32
  }
  func.func @transform_4(%arg0: i32, %arg1: i32) -> (i32, i32) {
    %c0_i32 = arith.constant 0 : i32
    %c0_i32_0 = arith.constant 0 : i32
    %c0_i32_1 = arith.constant 0 : i32
    return %c0_i32, %c0_i32_0 : i32, i32
  }
  func.func @transform_5(%arg0: i32, %arg1: i32) -> (i32, i32) {
    %c0_i32 = arith.constant 0 : i32
    %c0_i32_0 = arith.constant 0 : i32
    %c0_i32_1 = arith.constant 0 : i32
    return %c0_i32, %c0_i32_0 : i32, i32
  }
  func.func @transform_6(%arg0: i32, %arg1: i32) -> (i32, i32) {
    %c0_i32 = arith.constant 0 : i32
    %c0_i32_0 = arith.constant 0 : i32
    %c0_i32_1 = arith.constant 0 : i32
    return %c0_i32, %c0_i32_0 : i32, i32
  }
  func.func @transform_7(%arg0: i32, %arg1: i32) -> (i32, i32) {
    %c0_i32 = arith.constant 0 : i32
    %c0_i32_0 = arith.constant 0 : i32
    return %arg0, %c0_i32 : i32, i32
  }
}

</mosaic_0001>

<bundles_post_ra>
// kernel: feed_forward.1
= control target key start
LH: loop header
LB: loop body
LE: loop exit
PB: predicated region body
PF: predicated region fallthrough
CT: control target
= control target key end

     0   :  { %vm34_vm0 = vcmask 261120   ;;  %s586_s0 = inlined_call_operand.vmem [shape: f32[16,32], index: 0, kind: input, shape index: {}]   ;;  %s587_s1 = inlined_call_operand.vmem [shape: bf16[32,128], index: 1, kind: input, shape index: {}]   ;;  %s588_s2 = inlined_call_operand.vmem [shape: f32[1,128], index: 2, kind: input, shape index: {}]   ;;  %s589_s3 = inlined_call_operand.vmem [shape: bf16[128,32], index: 3, kind: input, shape index: {}]   ;;  %s590_s4 = inlined_call_operand.vmem [shape: f32[1,32], index: 4, kind: input, shape index: {}]   ;;  %s591_s5 = inlined_call_operand.vmem [shape: f32[1,32], index: 5, kind: input, shape index: {}]   ;;  %s592_s6 = inlined_call_operand.vmem [shape: f32[1,32], index: 6, kind: input, shape index: {}]   ;;  %s593_s7 = inlined_call_operand.hbm [shape: f32[16,32], index: 7, kind: output, shape index: {}]  }
   0x1   :  { %v507_v0 = vld [vmem:[%s586_s0] sm:$0xff]  ;;  %v512_v1 = vld [vmem:[%s586_s0 + $0x8] sm:$0xff] }
   0x2   :  { %v35_v2 = vsel %vm34_vm0, %v507_v0, 0.0  ;;  %v38_v3 = vsel %vm34_vm0, %v512_v1, 0.0 }
   0x3   :  { %36 = vadd.xlane.f32.xlu0 %v35_v2 }
   0x7   :  { %39 = vadd.xlane.f32.xlu0 %v38_v3 }
   0x8   :  { %12 = vsyncpa [#allocation5], 0  ;;  %v413_v14 = vld [vmem:[%s587_s1] sm:$0xff]   ;;  %v459_v15 = vmov 0.0   ;;  %v414_v16 = vld [vmem:[%s587_s1 + $0x8] sm:$0xff]   ;;  %vm460_vm1 = vmmov 0  }
   0x9   :  { %380 = vmatprep.subr.bf16.mxu0 %v459_v15  ;;  %82 = vst.msk [vmem:[#allocation3] sm:$0xff] %vm34_vm0, %v459_v15  ;;  %83 = vst.msk [vmem:[#allocation3 + $0x8] sm:$0xff] %vm34_vm0, %v459_v15  ;;  %388 = vmatprep.subr.bf16.mxu1 %v459_v15  ;;  %v353_v25 = vld [vmem:[%s591_s5] ss:$0 sm:$0xff]  ;;  %v416_v36 = vld [vmem:[%s589_s3 + $0x8] sm:$0xff]   ;;  %s461_s27 = smov [#allocation4]  }
   0xa   :  { %381 = vmatpush3.bf16.msra.mxu0 %v413_v14  ;;  %384 = vmatprep.mubr.msk.bf16.mxu0 %vm460_vm1, %v459_v15  ;;  %v354_v29 = vld [vmem:[%s592_s6] ss:$0 sm:$0xff]  ;;  %v417_v37 = vld [vmem:[%s589_s3 + $0x10] sm:$0xff]   ;;  %v418_v38 = vld [vmem:[%s589_s3 + $0x18] sm:$0xff]   ;;  %s342_s0 = sshll.u32 %s461_s27, 4  ;;  %s343_s0 = int_to_ptr.vmem [resolvable:$true] %s342_s0 }
   0xb   :  { %382 = vmatprep.subr.bf16.mxu0 %v459_v15  ;;  %404 = vmatprep.mubr.msk.bf16.mxu1 %vm460_vm1, %v459_v15  ;;  %v415_v35 = vld [vmem:[%s589_s3] sm:$0xff]   ;;  %v420_v40 = vld [vmem:[%s589_s3 + $0x28] sm:$0xff]   ;;  %v421_v41 = vld [vmem:[%s589_s3 + $0x30] sm:$0xff]   ;;  %s435_s28 = scalar_lea.vmem %s343_s0, 256  ;;  %p440_p1 = scmp.lt.s32.totalorder %s343_s0, %s343_s0 }
   0xc   :  { %389 = vmatpush3.bf16.msra.mxu1 %v415_v35  ;;  %v419_v39 = vld [vmem:[%s589_s3 + $0x20] sm:$0xff]   ;;  %v422_v42 = vld [vmem:[%s589_s3 + $0x38] sm:$0xff]   ;;  %p436_p0 = scmp.ne.s32.totalorder %s343_s0, %s435_s28  ;;  %p441_p2 = scmp.lt.s32.totalorder %s435_s28, %s435_s28 }
   0xd   :  { %390 = vmatprep.subr.bf16.mxu1 %v459_v15  ;;  %v355_v43 = vld [vmem:[%s588_s2] ss:$0 sm:$0xff] }
   0xe   :  { %383 = vmatpush3.bf16.msra.mxu0 %v414_v16  ;;  %p442_p3 = por %p441_p2, %p440_p1 }
  0x10   :  { %391 = vmatpush3.bf16.msra.mxu1 %v416_v36  ;;  %p443_p4 = pnand %p442_p3, %p436_p0 }
  0x11   :  { %392 = vmatprep.subr.bf16.mxu1 %v459_v15 }
  0x14   :  { %393 = vmatpush3.bf16.msra.mxu1 %v417_v37 }
  0x15   :  { %394 = vmatprep.subr.bf16.mxu1 %v459_v15 }
  0x18   :  { %395 = vmatpush3.bf16.msra.mxu1 %v418_v38 }
  0x19   :  { %396 = vmatprep.subr.bf16.mxu1 %v459_v15 }
  0x1c   :  { %397 = vmatpush3.bf16.msra.mxu1 %v419_v39  ;;  %v206_v39 = vld [vmem:[#allocation3] sm:$0xff] }
  0x1d   :  { %398 = vmatprep.subr.bf16.mxu1 %v459_v15 }
  0x20   :  { %399 = vmatpush3.bf16.msra.mxu1 %v420_v40 }
  0x21   :  { %400 = vmatprep.subr.bf16.mxu1 %v459_v15 }
  0x24   :  { %401 = vmatpush3.bf16.msra.mxu1 %v421_v41  ;;  %v207_v41 = vld [vmem:[#allocation3 + $0x8] sm:$0xff] }
  0x25   :  { %402 = vmatprep.subr.bf16.mxu1 %v459_v15 }
  0x28   :  { %403 = vmatpush3.bf16.msra.mxu1 %v422_v42 }
  0x90   :  { %v37_v4 = vpop.xlane.xlu0 %36 }
  0x91   :  { %v42_v5 = vmul.f32 0.03125, %v37_v4 }
  0x93   :  { %v44_v6 = vsub.f32 %v507_v0, %v42_v5 }
  0x94   :  { %v40_v7 = vpop.xlane.xlu0 %39 }
  0x95   :  { %v43_v8 = vmul.f32 0.03125, %v40_v7  ;;  %v46_v9 = vmul.f32 %v44_v6, %v44_v6 }
  0x97   :  { %v45_v10 = vsub.f32 %v512_v1, %v43_v8  ;;  %v48_v11 = vsel %vm34_vm0, %v46_v9, 0.0 }
  0x98   :  { %49 = vadd.xlane.f32.xlu1 %v48_v11 }
  0x99   :  { %v47_v12 = vmul.f32 %v45_v10, %v45_v10 }
  0x9b   :  { %v51_v13 = vsel %vm34_vm0, %v47_v12, 0.0 }
  0x9c   :  { %52 = vadd.xlane.f32.xlu1 %v51_v13 }
 0x125   :  { %v50_v17 = vpop.xlane.xlu1 %49 }
 0x126   :  { %v54_v18 = vmul.f32 0.03125, %v50_v17 }
 0x128   :  { %v56_v19 = vadd.f32 1e-05, %v54_v18 }
 0x129   :  { %v53_v20 = vpop.xlane.xlu1 %52 }
 0x12a   :  { %423 = vrsqrt.f32 %v56_v19  ;;  %v55_v21 = vmul.f32 0.03125, %v53_v20 }
 0x12c   :  { %v57_v22 = vadd.f32 1e-05, %v55_v21 }
 0x12e   :  { %425 = vrsqrt.f32 %v57_v22 }
 0x134   :  { %v424_v23 = vpop.eup %423 }
 0x135   :  { %v60_v24 = vmul.f32 %v424_v23, %v44_v6 }
 0x137   :  { %v69_v27 = vmul.f32 %v353_v25, %v60_v24 }
 0x138   :  { %v426_v26 = vpop.eup %425 }
 0x139   :  { %v61_v28 = vmul.f32 %v426_v26, %v45_v10  ;;  %v78_v31 = vadd.f32 %v354_v29, %v69_v27 }
 0x13b   :  { %v70_v30 = vmul.f32 %v353_v25, %v61_v28 }
 0x13d   :  { %v79_v32 = vadd.f32 %v354_v29, %v70_v30 }
 0x13f   :  { %v80_v33 = vpack.c.bf16 %v79_v32, %v78_v31 }
 0x141   :  { %81 = vst.msk [vmem:[#allocation2] sm:$0xff] %vm34_vm0, %v80_v33 }
 0x148   :  { %v84_v34 = vld [vmem:[#allocation2] sm:$0xff] }
 0x149   :  { %385 = vmatmul.mubr.msk.bf16.vlgmr.msra.gmra.mrb[0].mxu0 %vm34_vm0, %v84_v34 }
 0x21c   :  { %v146_v44 = vpop.f32.mrb[0].mxu0 }
 0x21d   :  { %v147_v45 = vadd.f32 %v355_v43, %v146_v44  ;;  %v386_v46 = vpop.f32.mrb[1].mxu0 }
 0x21e   :  { %v149_v47 = vpop.f32.mrb[2].mxu0 }
 0x21f   :  { %v155_v48 = vmul.f32 0.70710677, %v147_v45  ;;  %v150_v49 = vadd.f32 %v355_v43, %v149_v47  ;;  %v387_v50 = vpop.f32.mrb[3].mxu0  ;;  %v153_v33 = vmul.f32 0.5, %v147_v45  ;;  %v367_v45 = vld [vmem:[%s590_s4] ss:$0 sm:$0xff] }
 0x221   :  { %v157_v51 = vand.u32 2147483647, %v155_v48  ;;  %v156_v52 = vmul.f32 0.70710677, %v150_v49  ;;  %vm195_vm2 = vcmp.ge.f32.partialorder %v155_v48, 0.0  ;;  %v154_v34 = vmul.f32 0.5, %v150_v49 }
 0x223   :  { %v159_v53 = vmul.f32 0.3275911, %v157_v51  ;;  %v158_v54 = vand.u32 2147483647, %v156_v52  ;;  %v183_v58 = vmul.f32 %v157_v51, %v157_v51  ;;  %vm196_vm3 = vcmp.ge.f32.partialorder %v156_v52, 0.0 }
 0x225   :  { %v161_v55 = vadd.f32 1.0, %v159_v53  ;;  %v160_v56 = vmul.f32 0.3275911, %v158_v54  ;;  %v184_v59 = vmul.f32 %v158_v54, %v158_v54  ;;  %v185_v61 = vsub.f32 0.0, %v183_v58 }
 0x227   :  { %427 = vrcp.f32 %v161_v55  ;;  %v162_v57 = vadd.f32 1.0, %v160_v56  ;;  %v186_v3 = vsub.f32 0.0, %v184_v59  ;;  %v187_v4 = vmul.f32 1.442695, %v185_v61 }
 0x229   :  { %429 = vrcp.f32 %v162_v57  ;;  %v189_v9 = vmul.f32 1.442695, %v186_v3 }
 0x22a   :  { %431 = vpow2.f32 %v187_v4 }
 0x22b   :  { %433 = vpow2.f32 %v189_v9 }
 0x231   :  { %v428_v60 = vpop.eup %427 }
 0x232   :  { %v165_v62 = vmul.f32 1.0614054, %v428_v60 }
 0x233   :  { %v430_v63 = vpop.eup %429 }
 0x234   :  { %v167_v2 = vadd.f32 -1.4531521, %v165_v62  ;;  %v166_v5 = vmul.f32 1.0614054, %v430_v63  ;;  %v432_v20 = vpop.eup %431 }
 0x235   :  { %v434_v24 = vpop.eup %433 }
 0x236   :  { %v169_v6 = vmul.f32 %v428_v60, %v167_v2  ;;  %v168_v7 = vadd.f32 -1.4531521, %v166_v5 }
 0x238   :  { %v171_v8 = vadd.f32 1.4214138, %v169_v6  ;;  %v170_v10 = vmul.f32 %v430_v63, %v168_v7 }
 0x23a   :  { %v173_v11 = vmul.f32 %v428_v60, %v171_v8  ;;  %v172_v12 = vadd.f32 1.4214138, %v170_v10 }
 0x23c   :  { %v175_v13 = vadd.f32 -0.28449672, %v173_v11  ;;  %v174_v14 = vmul.f32 %v430_v63, %v172_v12 }
 0x23e   :  { %v177_v15 = vmul.f32 %v428_v60, %v175_v13  ;;  %v176_v16 = vadd.f32 -0.28449672, %v174_v14 }
 0x240   :  { %v179_v17 = vadd.f32 0.2548296, %v177_v15  ;;  %v178_v18 = vmul.f32 %v430_v63, %v176_v16 }
 0x242   :  { %v181_v19 = vmul.f32 %v428_v60, %v179_v17  ;;  %v180_v21 = vadd.f32 0.2548296, %v178_v18 }
 0x244   :  { %v191_v22 = vmul.f32 %v432_v20, %v181_v19  ;;  %v182_v23 = vmul.f32 %v430_v63, %v180_v21 }
 0x246   :  { %v193_v25 = vsub.f32 1.0, %v191_v22  ;;  %v192_v26 = vmul.f32 %v434_v24, %v182_v23 }
 0x248   :  { %v197_v27 = vsub.f32 0.0, %v193_v25  ;;  %v194_v28 = vsub.f32 1.0, %v192_v26 }
 0x24a   :  { %v199_v29 = vsel %vm195_vm2, %v193_v25, %v197_v27  ;;  %v198_v30 = vsub.f32 0.0, %v194_v28 }
 0x24b   :  { %v201_v31 = vadd.f32 1.0, %v199_v29 }
 0x24c   :  { %v200_v32 = vsel %vm196_vm3, %v194_v28, %v198_v30 }
 0x24d   :  { %v202_v35 = vadd.f32 1.0, %v200_v32  ;;  %v203_v36 = vmul.f32 %v201_v31, %v153_v33 }
 0x24f   :  { %v204_v37 = vmul.f32 %v202_v35, %v154_v34 }
 0x251   :  { %v205_v38 = vpack.c.bf16 %v204_v37, %v203_v36 }
 0x253   :  { %405 = vmatmul.mubr.bf16.vlgmr.msra.gmra.mrb[0].mxu1 %v205_v38 }
 0x326   :  { %v306_v40 = vpop.f32.mrb[0].mxu1 }
 0x327   :  { %v313_v42 = vadd.f32 %v306_v40, %v206_v39  ;;  %v406_v43 = vpop.f32.mrb[1].mxu1 }
 0x328   :  { %v309_v44 = vpop.f32.mrb[2].mxu1 }
 0x329   :  { %315 = vst.msk [vmem:[#allocation3] sm:$0xff] %vm34_vm0, %v313_v42  ;;  %v314_v46 = vadd.f32 %v309_v44, %v207_v41  ;;  %v407_v47 = vpop.f32.mrb[3].mxu1 }
 0x32b   :  { %316 = vst.msk [vmem:[#allocation3 + $0x8] sm:$0xff] %vm34_vm0, %v314_v46 }
 0x330   :  { %v320_v48 = vld [vmem:[#allocation3] sm:$0xff] }
 0x331   :  { %v329_v49 = vadd.f32 %v367_v45, %v320_v48 }
 0x332   :  { %v321_v50 = vld [vmem:[#allocation3 + $0x8] sm:$0xff] }
 0x333   :  { %v330_v51 = vadd.f32 %v367_v45, %v321_v50  ;;  %v333_v52 = vadd.f32 %v329_v49, %v507_v0 }
 0x335   :  { %v334_v53 = vadd.f32 %v330_v51, %v512_v1  ;;  %335 = vst.msk [vmem:[#allocation4] sm:$0xff] %vm34_vm0, %v333_v52 }
 0x337   :  { %336 = vst.msk [vmem:[#allocation4 + $0x8] sm:$0xff] %vm34_vm0, %v334_v53 }
 0x338   :  { %446 = shalt.err (!%p443_p4)
}
 0x339   :  { %s447_s30 = scalar_lea.hbm %s593_s7, 256 }
 0x33a   :  { %p448_p5 = scmp.ne.s32.totalorder %s593_s7, %s447_s30  ;;  %p451_p6 = scmp.lt.u32.totalorder %s447_s30, %s593_s7 }
 0x33c   :  { %p453_p7 = pnand %p451_p6, %p448_p5 }
 0x33e   :  { %456 = shalt.err (!%p453_p7)
}
 0x33f   :  { %s462_s11 = smov 128   ;;  %s463_s12 = smov 8  }
 0x340   :  { %348 = dma.vmem_to_hbm [thread:$0]  %s343_s0, 256, %s593_s7, [#allocation5], %s462_s11, %s462_s11, %s463_s12  }
 0x341   :  { %457 = dma.done.wait [#allocation5], 256  }
 0x342   :  { %458 = vsyncadd [#allocation5], 4294967040 }
 0x343   :  { %352 = vsyncpa [#allocation5], 1 }

</bundles_post_ra>
